<compile_context>
chip_gen: v5e
topology: v5e:2x2
jax: 0.10.0
libtpu: 0.0.40
codegen_flags: <defaults>
</compile_context>

<pallas_src>
import jax
import jax.numpy as jnp
from jax.experimental import pallas as pl
from jax.experimental.pallas import tpu as pltpu

INPUT_SIZE = 86
HIDDEN_SIZE = 32
OUTPUT_SIZE = 1
SEQ_LEN = 8


def lstm_kernel(x_ref, wih_ref, whh_ref, b_ref, wfc_ref, bfc_ref, out_ref):
    """Whole LSTM recurrence + final FC + sigmoid in one kernel invocation.

    x_ref   : (SEQ_LEN, INPUT_SIZE)          bf16
    wih_ref : (INPUT_SIZE, 4*HIDDEN_SIZE)    bf16   (W_ih transposed)
    whh_ref : (HIDDEN_SIZE, 4*HIDDEN_SIZE)   bf16   (W_hh transposed)
    b_ref   : (1, 4*HIDDEN_SIZE)             f32    (b_ih + b_hh)
    wfc_ref : (1, HIDDEN_SIZE)               f32    (fc weight, PyTorch layout)
    bfc_ref : (1, OUTPUT_SIZE)               f32
    out_ref : (1, OUTPUT_SIZE)               f32
    """
    H = HIDDEN_SIZE
    seq = x_ref.shape[0]

    # Hoisted input projection: one (seq, I) @ (I, 4H) matmul + bias, computed once.
    # bf16 operands, f32 accumulation.
    gates_x = (jnp.dot(x_ref[...], wih_ref[...],
                       preferred_element_type=jnp.float32)
               + b_ref[...])                                  # (seq, 4H) f32

    whh = whh_ref[...]                                        # (H, 4H) bf16

    h = jnp.zeros((1, H), jnp.float32)
    c = jnp.zeros((1, H), jnp.float32)

    # Fully dependent recurrence, statically unrolled (seq is tiny and static).
    # Only the (1,H)@(H,4H) h-projection remains on the per-step MXU chain.
    for t in range(seq):
        gates = gates_x[t:t + 1, :] + jnp.dot(
            h.astype(jnp.bfloat16), whh,
            preferred_element_type=jnp.float32)               # (1, 4H) f32

        # Two full-vreg transcendentals (EUP) instead of four 32-lane slices.
        sig = jax.nn.sigmoid(gates)                           # (1, 128)
        tnh = jnp.tanh(gates)                                 # (1, 128)
        i_g = sig[:, 0:H]
        f_g = sig[:, H:2 * H]
        g_g = tnh[:, 2 * H:3 * H]
        o_g = sig[:, 3 * H:4 * H]

        c = f_g * c + i_g * g_g
        h = o_g * jnp.tanh(c)

    # Final FC (1,32)x(32,1): elementwise multiply + lane reduce on VPU/XLU.
    out = jnp.sum(h * wfc_ref[...], axis=-1, keepdims=True) + bfc_ref[...]
    out_ref[...] = jax.nn.sigmoid(out)

    # TODO(synk): if many independent sequences are available, batch them (M = batch in
    # both matmuls, 'parallel' grid axis over batch) to get real MXU utilization.


def prepare_params(w_ih, w_hh, b_ih, b_hh, w_fc, b_fc):
    """One-time parameter packing (do at load time, NOT per forward).

    w_ih : (4H, I), w_hh : (4H, H), b_ih/b_hh : (4H,)   -- PyTorch layout
    w_fc : (1, H),  b_fc : (1,)
    """
    wih_t = jnp.transpose(w_ih).astype(jnp.bfloat16)          # (I, 4H)
    whh_t = jnp.transpose(w_hh).astype(jnp.bfloat16)          # (H, 4H)
    b = (b_ih + b_hh).reshape(1, 4 * HIDDEN_SIZE).astype(jnp.float32)
    wfc = w_fc.reshape(1, HIDDEN_SIZE).astype(jnp.float32)    # (1, H)
    bfc = b_fc.reshape(1, OUTPUT_SIZE).astype(jnp.float32)
    return wih_t, whh_t, b, wfc, bfc


@jax.jit
def lstm_model_forward(x, wih_t, whh_t, b, wfc, bfc):
    """x : (seq_len, input_size) f32 (== input.view(len(input), 1, -1) with batch=1 squeezed)."""
    seq_len, in_size = x.shape
    assert in_size == INPUT_SIZE, "kernel assumes batch=1 with the batch dim squeezed"

    vmem = pl.BlockSpec(memory_space=pltpu.MemorySpace.VMEM)
    return pl.pallas_call(
        lstm_kernel,
        out_shape=jax.ShapeDtypeStruct((1, OUTPUT_SIZE), jnp.float32),
        in_specs=[vmem] * 6,
        out_specs=vmem,
    )(x.astype(jnp.bfloat16), wih_t, whh_t, b, wfc, bfc)


def init_params(key):
    """Deterministic parameter init (PyTorch-style uniform(-1/sqrt(H), 1/sqrt(H)))."""
    k = 1.0 / jnp.sqrt(jnp.float32(HIDDEN_SIZE))
    keys = jax.random.split(key, 6)
    u = lambda kk, shape: jax.random.uniform(kk, shape, jnp.float32, -k, k)
    w_ih = u(keys[0], (4 * HIDDEN_SIZE, INPUT_SIZE))
    w_hh = u(keys[1], (4 * HIDDEN_SIZE, HIDDEN_SIZE))
    b_ih = u(keys[2], (4 * HIDDEN_SIZE,))
    b_hh = u(keys[3], (4 * HIDDEN_SIZE,))
    w_fc = u(keys[4], (OUTPUT_SIZE, HIDDEN_SIZE))
    b_fc = u(keys[5], (OUTPUT_SIZE,))
    return w_ih, w_hh, b_ih, b_hh, w_fc, b_fc


def reference_forward(x, w_ih, w_hh, b_ih, b_hh, w_fc, b_fc):
    """Pure-JAX f32 reference of the PyTorch forward (for sanity checking)."""
    H = HIDDEN_SIZE
    h = jnp.zeros((1, H), jnp.float32)
    c = jnp.zeros((1, H), jnp.float32)
    for t in range(x.shape[0]):
        x_t = x[t:t + 1, :]
        gates = x_t @ w_ih.T + h @ w_hh.T + b_ih + b_hh
        i_g = jax.nn.sigmoid(gates[:, 0:H])
        f_g = jax.nn.sigmoid(gates[:, H:2 * H])
        g_g = jnp.tanh(gates[:, 2 * H:3 * H])
        o_g = jax.nn.sigmoid(gates[:, 3 * H:4 * H])
        c = f_g * c + i_g * g_g
        h = o_g * jnp.tanh(c)
    return jax.nn.sigmoid(h @ w_fc.T + b_fc)


if __name__ == "__main__":
    key = jax.random.PRNGKey(0)
    key_x, key_p = jax.random.split(key)

    # Input: the module views its input as (seq_len, 1, input_size); we use seq=8.
    x = jax.random.normal(key_x, (SEQ_LEN, INPUT_SIZE), jnp.float32)
    raw_params = init_params(key_p)
    prepared = prepare_params(*raw_params)

    out = lstm_model_forward(x, *prepared)
    out = jax.block_until_ready(out)

    ref = reference_forward(x, *raw_params)
    assert out.shape == (1, OUTPUT_SIZE)
    # bf16 matmul operands (f32 accumulation) -> loosened tolerance vs. the f32 reference.
    assert jnp.allclose(out, ref, atol=2e-2, rtol=0.0), (out, ref)

    print("KERNEL_OK")
</pallas_src>

<mosaic_0001>
module attributes {stable_mosaic.version = 11 : i64} {
  func.func @lstm_kernel(%arg0: memref<8x86xbf16, #tpu.memory_space<vmem>>, %arg1: memref<86x128xbf16, #tpu.memory_space<vmem>>, %arg2: memref<32x128xbf16, #tpu.memory_space<vmem>>, %arg3: memref<1x128xf32, #tpu.memory_space<vmem>>, %arg4: memref<1x32xf32, #tpu.memory_space<vmem>>, %arg5: memref<1x1xf32, #tpu.memory_space<vmem>>, %arg6: memref<1x1xf32, #tpu.memory_space<vmem>>) attributes {dimension_semantics = [], scalar_prefetch = 0 : i64, scratch_operands = 0 : i64, tpu.core_type = #tpu.core_type<tc>} {
    %c0 = arith.constant 0 : index
    %c0_0 = arith.constant 0 : index
    %0 = vector.load %arg0[%c0, %c0_0] : memref<8x86xbf16, #tpu.memory_space<vmem>>, vector<8x86xbf16>
    %c0_1 = arith.constant 0 : index
    %c0_2 = arith.constant 0 : index
    %1 = vector.load %arg1[%c0_1, %c0_2] : memref<86x128xbf16, #tpu.memory_space<vmem>>, vector<86x128xbf16>
    %cst = arith.constant dense<0.000000e+00> : vector<8x128xf32>
    %2 = tpu.matmul %0, %1, %cst {dimension_numbers = #tpu.dot_dimension_numbers<[1], [0], [0], [1], [0, 0, 1, 1], [], []>} : vector<8x86xbf16>, vector<86x128xbf16>, vector<8x128xf32> -> vector<8x128xf32>
    %c0_3 = arith.constant 0 : index
    %c0_4 = arith.constant 0 : index
    %3 = vector.load %arg3[%c0_3, %c0_4] : memref<1x128xf32, #tpu.memory_space<vmem>>, vector<1x128xf32>
    %4 = vector.broadcast %3 : vector<1x128xf32> to vector<8x128xf32>
    %5 = arith.addf %2, %4 : vector<8x128xf32>
    %c0_5 = arith.constant 0 : index
    %c0_6 = arith.constant 0 : index
    %6 = vector.load %arg2[%c0_5, %c0_6] : memref<32x128xbf16, #tpu.memory_space<vmem>>, vector<32x128xbf16>
    %cst_7 = arith.constant 0.000000e+00 : f32
    %7 = vector.broadcast %cst_7 : f32 to vector<1x32xf32>
    %cst_8 = arith.constant 0.000000e+00 : f32
    %8 = vector.broadcast %cst_8 : f32 to vector<1x32xf32>
    %9 = vector.extract_strided_slice %5 {offsets = [0, 0], sizes = [1, 128], strides = [1, 1]} : vector<8x128xf32> to vector<1x128xf32>
    %10 = arith.truncf %7 : vector<1x32xf32> to vector<1x32xbf16>
    %cst_9 = arith.constant dense<0.000000e+00> : vector<1x128xf32>
    %11 = tpu.matmul %10, %6, %cst_9 {dimension_numbers = #tpu.dot_dimension_numbers<[1], [0], [0], [1], [0, 0, 1, 1], [], []>} : vector<1x32xbf16>, vector<32x128xbf16>, vector<1x128xf32> -> vector<1x128xf32>
    %12 = arith.addf %9, %11 : vector<1x128xf32>
    %13 = arith.negf %12 : vector<1x128xf32>
    %14 = math.exp %13 : vector<1x128xf32>
    %cst_10 = arith.constant 1.000000e+00 : f32
    %15 = vector.broadcast %cst_10 : f32 to vector<1x128xf32>
    %16 = arith.addf %15, %14 : vector<1x128xf32>
    %17 = arith.divf %15, %16 : vector<1x128xf32>
    %18 = math.tanh %12 : vector<1x128xf32>
    %19 = vector.extract_strided_slice %17 {offsets = [0, 0], sizes = [1, 32], strides = [1, 1]} : vector<1x128xf32> to vector<1x32xf32>
    %20 = vector.extract_strided_slice %17 {offsets = [0, 32], sizes = [1, 32], strides = [1, 1]} : vector<1x128xf32> to vector<1x32xf32>
    %21 = vector.extract_strided_slice %18 {offsets = [0, 64], sizes = [1, 32], strides = [1, 1]} : vector<1x128xf32> to vector<1x32xf32>
    %22 = vector.extract_strided_slice %17 {offsets = [0, 96], sizes = [1, 32], strides = [1, 1]} : vector<1x128xf32> to vector<1x32xf32>
    %23 = arith.mulf %20, %8 : vector<1x32xf32>
    %24 = arith.mulf %19, %21 : vector<1x32xf32>
    %25 = arith.addf %23, %24 : vector<1x32xf32>
    %26 = math.tanh %25 : vector<1x32xf32>
    %27 = arith.mulf %22, %26 : vector<1x32xf32>
    %28 = vector.extract_strided_slice %5 {offsets = [1, 0], sizes = [1, 128], strides = [1, 1]} : vector<8x128xf32> to vector<1x128xf32>
    %29 = arith.truncf %27 : vector<1x32xf32> to vector<1x32xbf16>
    %cst_11 = arith.constant dense<0.000000e+00> : vector<1x128xf32>
    %30 = tpu.matmul %29, %6, %cst_11 {dimension_numbers = #tpu.dot_dimension_numbers<[1], [0], [0], [1], [0, 0, 1, 1], [], []>} : vector<1x32xbf16>, vector<32x128xbf16>, vector<1x128xf32> -> vector<1x128xf32>
    %31 = arith.addf %28, %30 : vector<1x128xf32>
    %32 = arith.negf %31 : vector<1x128xf32>
    %33 = math.exp %32 : vector<1x128xf32>
    %cst_12 = arith.constant 1.000000e+00 : f32
    %34 = vector.broadcast %cst_12 : f32 to vector<1x128xf32>
    %35 = arith.addf %34, %33 : vector<1x128xf32>
    %36 = arith.divf %34, %35 : vector<1x128xf32>
    %37 = math.tanh %31 : vector<1x128xf32>
    %38 = vector.extract_strided_slice %36 {offsets = [0, 0], sizes = [1, 32], strides = [1, 1]} : vector<1x128xf32> to vector<1x32xf32>
    %39 = vector.extract_strided_slice %36 {offsets = [0, 32], sizes = [1, 32], strides = [1, 1]} : vector<1x128xf32> to vector<1x32xf32>
    %40 = vector.extract_strided_slice %37 {offsets = [0, 64], sizes = [1, 32], strides = [1, 1]} : vector<1x128xf32> to vector<1x32xf32>
    %41 = vector.extract_strided_slice %36 {offsets = [0, 96], sizes = [1, 32], strides = [1, 1]} : vector<1x128xf32> to vector<1x32xf32>
    %42 = arith.mulf %39, %25 : vector<1x32xf32>
    %43 = arith.mulf %38, %40 : vector<1x32xf32>
    %44 = arith.addf %42, %43 : vector<1x32xf32>
    %45 = math.tanh %44 : vector<1x32xf32>
    %46 = arith.mulf %41, %45 : vector<1x32xf32>
    %47 = vector.extract_strided_slice %5 {offsets = [2, 0], sizes = [1, 128], strides = [1, 1]} : vector<8x128xf32> to vector<1x128xf32>
    %48 = arith.truncf %46 : vector<1x32xf32> to vector<1x32xbf16>
    %cst_13 = arith.constant dense<0.000000e+00> : vector<1x128xf32>
    %49 = tpu.matmul %48, %6, %cst_13 {dimension_numbers = #tpu.dot_dimension_numbers<[1], [0], [0], [1], [0, 0, 1, 1], [], []>} : vector<1x32xbf16>, vector<32x128xbf16>, vector<1x128xf32> -> vector<1x128xf32>
    %50 = arith.addf %47, %49 : vector<1x128xf32>
    %51 = arith.negf %50 : vector<1x128xf32>
    %52 = math.exp %51 : vector<1x128xf32>
    %cst_14 = arith.constant 1.000000e+00 : f32
    %53 = vector.broadcast %cst_14 : f32 to vector<1x128xf32>
    %54 = arith.addf %53, %52 : vector<1x128xf32>
    %55 = arith.divf %53, %54 : vector<1x128xf32>
    %56 = math.tanh %50 : vector<1x128xf32>
    %57 = vector.extract_strided_slice %55 {offsets = [0, 0], sizes = [1, 32], strides = [1, 1]} : vector<1x128xf32> to vector<1x32xf32>
    %58 = vector.extract_strided_slice %55 {offsets = [0, 32], sizes = [1, 32], strides = [1, 1]} : vector<1x128xf32> to vector<1x32xf32>
    %59 = vector.extract_strided_slice %56 {offsets = [0, 64], sizes = [1, 32], strides = [1, 1]} : vector<1x128xf32> to vector<1x32xf32>
    %60 = vector.extract_strided_slice %55 {offsets = [0, 96], sizes = [1, 32], strides = [1, 1]} : vector<1x128xf32> to vector<1x32xf32>
    %61 = arith.mulf %58, %44 : vector<1x32xf32>
    %62 = arith.mulf %57, %59 : vector<1x32xf32>
    %63 = arith.addf %61, %62 : vector<1x32xf32>
    %64 = math.tanh %63 : vector<1x32xf32>
    %65 = arith.mulf %60, %64 : vector<1x32xf32>
    %66 = vector.extract_strided_slice %5 {offsets = [3, 0], sizes = [1, 128], strides = [1, 1]} : vector<8x128xf32> to vector<1x128xf32>
    %67 = arith.truncf %65 : vector<1x32xf32> to vector<1x32xbf16>
    %cst_15 = arith.constant dense<0.000000e+00> : vector<1x128xf32>
    %68 = tpu.matmul %67, %6, %cst_15 {dimension_numbers = #tpu.dot_dimension_numbers<[1], [0], [0], [1], [0, 0, 1, 1], [], []>} : vector<1x32xbf16>, vector<32x128xbf16>, vector<1x128xf32> -> vector<1x128xf32>
    %69 = arith.addf %66, %68 : vector<1x128xf32>
    %70 = arith.negf %69 : vector<1x128xf32>
    %71 = math.exp %70 : vector<1x128xf32>
    %cst_16 = arith.constant 1.000000e+00 : f32
    %72 = vector.broadcast %cst_16 : f32 to vector<1x128xf32>
    %73 = arith.addf %72, %71 : vector<1x128xf32>
    %74 = arith.divf %72, %73 : vector<1x128xf32>
    %75 = math.tanh %69 : vector<1x128xf32>
    %76 = vector.extract_strided_slice %74 {offsets = [0, 0], sizes = [1, 32], strides = [1, 1]} : vector<1x128xf32> to vector<1x32xf32>
    %77 = vector.extract_strided_slice %74 {offsets = [0, 32], sizes = [1, 32], strides = [1, 1]} : vector<1x128xf32> to vector<1x32xf32>
    %78 = vector.extract_strided_slice %75 {offsets = [0, 64], sizes = [1, 32], strides = [1, 1]} : vector<1x128xf32> to vector<1x32xf32>
    %79 = vector.extract_strided_slice %74 {offsets = [0, 96], sizes = [1, 32], strides = [1, 1]} : vector<1x128xf32> to vector<1x32xf32>
    %80 = arith.mulf %77, %63 : vector<1x32xf32>
    %81 = arith.mulf %76, %78 : vector<1x32xf32>
    %82 = arith.addf %80, %81 : vector<1x32xf32>
    %83 = math.tanh %82 : vector<1x32xf32>
    %84 = arith.mulf %79, %83 : vector<1x32xf32>
    %85 = vector.extract_strided_slice %5 {offsets = [4, 0], sizes = [1, 128], strides = [1, 1]} : vector<8x128xf32> to vector<1x128xf32>
    %86 = arith.truncf %84 : vector<1x32xf32> to vector<1x32xbf16>
    %cst_17 = arith.constant dense<0.000000e+00> : vector<1x128xf32>
    %87 = tpu.matmul %86, %6, %cst_17 {dimension_numbers = #tpu.dot_dimension_numbers<[1], [0], [0], [1], [0, 0, 1, 1], [], []>} : vector<1x32xbf16>, vector<32x128xbf16>, vector<1x128xf32> -> vector<1x128xf32>
    %88 = arith.addf %85, %87 : vector<1x128xf32>
    %89 = arith.negf %88 : vector<1x128xf32>
    %90 = math.exp %89 : vector<1x128xf32>
    %cst_18 = arith.constant 1.000000e+00 : f32
    %91 = vector.broadcast %cst_18 : f32 to vector<1x128xf32>
    %92 = arith.addf %91, %90 : vector<1x128xf32>
    %93 = arith.divf %91, %92 : vector<1x128xf32>
    %94 = math.tanh %88 : vector<1x128xf32>
    %95 = vector.extract_strided_slice %93 {offsets = [0, 0], sizes = [1, 32], strides = [1, 1]} : vector<1x128xf32> to vector<1x32xf32>
    %96 = vector.extract_strided_slice %93 {offsets = [0, 32], sizes = [1, 32], strides = [1, 1]} : vector<1x128xf32> to vector<1x32xf32>
    %97 = vector.extract_strided_slice %94 {offsets = [0, 64], sizes = [1, 32], strides = [1, 1]} : vector<1x128xf32> to vector<1x32xf32>
    %98 = vector.extract_strided_slice %93 {offsets = [0, 96], sizes = [1, 32], strides = [1, 1]} : vector<1x128xf32> to vector<1x32xf32>
    %99 = arith.mulf %96, %82 : vector<1x32xf32>
    %100 = arith.mulf %95, %97 : vector<1x32xf32>
    %101 = arith.addf %99, %100 : vector<1x32xf32>
    %102 = math.tanh %101 : vector<1x32xf32>
    %103 = arith.mulf %98, %102 : vector<1x32xf32>
    %104 = vector.extract_strided_slice %5 {offsets = [5, 0], sizes = [1, 128], strides = [1, 1]} : vector<8x128xf32> to vector<1x128xf32>
    %105 = arith.truncf %103 : vector<1x32xf32> to vector<1x32xbf16>
    %cst_19 = arith.constant dense<0.000000e+00> : vector<1x128xf32>
    %106 = tpu.matmul %105, %6, %cst_19 {dimension_numbers = #tpu.dot_dimension_numbers<[1], [0], [0], [1], [0, 0, 1, 1], [], []>} : vector<1x32xbf16>, vector<32x128xbf16>, vector<1x128xf32> -> vector<1x128xf32>
    %107 = arith.addf %104, %106 : vector<1x128xf32>
    %108 = arith.negf %107 : vector<1x128xf32>
    %109 = math.exp %108 : vector<1x128xf32>
    %cst_20 = arith.constant 1.000000e+00 : f32
    %110 = vector.broadcast %cst_20 : f32 to vector<1x128xf32>
    %111 = arith.addf %110, %109 : vector<1x128xf32>
    %112 = arith.divf %110, %111 : vector<1x128xf32>
    %113 = math.tanh %107 : vector<1x128xf32>
    %114 = vector.extract_strided_slice %112 {offsets = [0, 0], sizes = [1, 32], strides = [1, 1]} : vector<1x128xf32> to vector<1x32xf32>
    %115 = vector.extract_strided_slice %112 {offsets = [0, 32], sizes = [1, 32], strides = [1, 1]} : vector<1x128xf32> to vector<1x32xf32>
    %116 = vector.extract_strided_slice %113 {offsets = [0, 64], sizes = [1, 32], strides = [1, 1]} : vector<1x128xf32> to vector<1x32xf32>
    %117 = vector.extract_strided_slice %112 {offsets = [0, 96], sizes = [1, 32], strides = [1, 1]} : vector<1x128xf32> to vector<1x32xf32>
    %118 = arith.mulf %115, %101 : vector<1x32xf32>
    %119 = arith.mulf %114, %116 : vector<1x32xf32>
    %120 = arith.addf %118, %119 : vector<1x32xf32>
    %121 = math.tanh %120 : vector<1x32xf32>
    %122 = arith.mulf %117, %121 : vector<1x32xf32>
    %123 = vector.extract_strided_slice %5 {offsets = [6, 0], sizes = [1, 128], strides = [1, 1]} : vector<8x128xf32> to vector<1x128xf32>
    %124 = arith.truncf %122 : vector<1x32xf32> to vector<1x32xbf16>
    %cst_21 = arith.constant dense<0.000000e+00> : vector<1x128xf32>
    %125 = tpu.matmul %124, %6, %cst_21 {dimension_numbers = #tpu.dot_dimension_numbers<[1], [0], [0], [1], [0, 0, 1, 1], [], []>} : vector<1x32xbf16>, vector<32x128xbf16>, vector<1x128xf32> -> vector<1x128xf32>
    %126 = arith.addf %123, %125 : vector<1x128xf32>
    %127 = arith.negf %126 : vector<1x128xf32>
    %128 = math.exp %127 : vector<1x128xf32>
    %cst_22 = arith.constant 1.000000e+00 : f32
    %129 = vector.broadcast %cst_22 : f32 to vector<1x128xf32>
    %130 = arith.addf %129, %128 : vector<1x128xf32>
    %131 = arith.divf %129, %130 : vector<1x128xf32>
    %132 = math.tanh %126 : vector<1x128xf32>
    %133 = vector.extract_strided_slice %131 {offsets = [0, 0], sizes = [1, 32], strides = [1, 1]} : vector<1x128xf32> to vector<1x32xf32>
    %134 = vector.extract_strided_slice %131 {offsets = [0, 32], sizes = [1, 32], strides = [1, 1]} : vector<1x128xf32> to vector<1x32xf32>
    %135 = vector.extract_strided_slice %132 {offsets = [0, 64], sizes = [1, 32], strides = [1, 1]} : vector<1x128xf32> to vector<1x32xf32>
    %136 = vector.extract_strided_slice %131 {offsets = [0, 96], sizes = [1, 32], strides = [1, 1]} : vector<1x128xf32> to vector<1x32xf32>
    %137 = arith.mulf %134, %120 : vector<1x32xf32>
    %138 = arith.mulf %133, %135 : vector<1x32xf32>
    %139 = arith.addf %137, %138 : vector<1x32xf32>
    %140 = math.tanh %139 : vector<1x32xf32>
    %141 = arith.mulf %136, %140 : vector<1x32xf32>
    %142 = vector.extract_strided_slice %5 {offsets = [7, 0], sizes = [1, 128], strides = [1, 1]} : vector<8x128xf32> to vector<1x128xf32>
    %143 = arith.truncf %141 : vector<1x32xf32> to vector<1x32xbf16>
    %cst_23 = arith.constant dense<0.000000e+00> : vector<1x128xf32>
    %144 = tpu.matmul %143, %6, %cst_23 {dimension_numbers = #tpu.dot_dimension_numbers<[1], [0], [0], [1], [0, 0, 1, 1], [], []>} : vector<1x32xbf16>, vector<32x128xbf16>, vector<1x128xf32> -> vector<1x128xf32>
    %145 = arith.addf %142, %144 : vector<1x128xf32>
    %146 = arith.negf %145 : vector<1x128xf32>
    %147 = math.exp %146 : vector<1x128xf32>
    %cst_24 = arith.constant 1.000000e+00 : f32
    %148 = vector.broadcast %cst_24 : f32 to vector<1x128xf32>
    %149 = arith.addf %148, %147 : vector<1x128xf32>
    %150 = arith.divf %148, %149 : vector<1x128xf32>
    %151 = math.tanh %145 : vector<1x128xf32>
    %152 = vector.extract_strided_slice %150 {offsets = [0, 0], sizes = [1, 32], strides = [1, 1]} : vector<1x128xf32> to vector<1x32xf32>
    %153 = vector.extract_strided_slice %150 {offsets = [0, 32], sizes = [1, 32], strides = [1, 1]} : vector<1x128xf32> to vector<1x32xf32>
    %154 = vector.extract_strided_slice %151 {offsets = [0, 64], sizes = [1, 32], strides = [1, 1]} : vector<1x128xf32> to vector<1x32xf32>
    %155 = vector.extract_strided_slice %150 {offsets = [0, 96], sizes = [1, 32], strides = [1, 1]} : vector<1x128xf32> to vector<1x32xf32>
    %156 = arith.mulf %153, %139 : vector<1x32xf32>
    %157 = arith.mulf %152, %154 : vector<1x32xf32>
    %158 = arith.addf %156, %157 : vector<1x32xf32>
    %159 = math.tanh %158 : vector<1x32xf32>
    %160 = arith.mulf %155, %159 : vector<1x32xf32>
    %c0_25 = arith.constant 0 : index
    %c0_26 = arith.constant 0 : index
    %161 = vector.load %arg4[%c0_25, %c0_26] : memref<1x32xf32, #tpu.memory_space<vmem>>, vector<1x32xf32>
    %162 = arith.mulf %160, %161 : vector<1x32xf32>
    %cst_27 = arith.constant dense<0.000000e+00> : vector<1xf32>
    %163 = vector.multi_reduction <add>, %162, %cst_27 [1] : vector<1x32xf32> to vector<1xf32>
    %164 = vector.shape_cast %163 : vector<1xf32> to vector<1x1xf32>
    %c0_28 = arith.constant 0 : index
    %c0_29 = arith.constant 0 : index
    %165 = vector.load %arg5[%c0_28, %c0_29] : memref<1x1xf32, #tpu.memory_space<vmem>>, vector<1x1xf32>
    %166 = arith.addf %164, %165 : vector<1x1xf32>
    %167 = arith.negf %166 : vector<1x1xf32>
    %168 = math.exp %167 : vector<1x1xf32>
    %cst_30 = arith.constant 1.000000e+00 : f32
    %169 = vector.broadcast %cst_30 : f32 to vector<1x1xf32>
    %170 = arith.addf %169, %168 : vector<1x1xf32>
    %171 = arith.divf %169, %170 : vector<1x1xf32>
    %c0_31 = arith.constant 0 : index
    %c0_32 = arith.constant 0 : index
    %172 = vector.load %arg6[%c0_31, %c0_32] : memref<1x1xf32, #tpu.memory_space<vmem>>, vector<1x1xf32>
    tpu.vector_store %arg6[%c0_31, %c0_32], %171 {strides = array<i32>} : memref<1x1xf32, #tpu.memory_space<vmem>>, vector<1x1xf32>,
    return
  }
}

</mosaic_0001>

<bundles_post_ra>
// kernel: lstm_model_forward.1
= control target key start
LH: loop header
LB: loop body
LE: loop exit
PB: predicated region body
PF: predicated region fallthrough
CT: control target
= control target key end

     0   :  { %s1044_s0 = inlined_call_operand.vmem [shape: bf16[8,86], index: 0, kind: input, shape index: {}]   ;;  %s1045_s1 = inlined_call_operand.hbm [shape: bf16[86,128], index: 1, kind: input, shape index: {}]   ;;  %s1046_s2 = inlined_call_operand.hbm [shape: bf16[32,128], index: 2, kind: input, shape index: {}]   ;;  %s1047_s3 = inlined_call_operand.vmem [shape: f32[1,128], index: 3, kind: input, shape index: {}]   ;;  %s1048_s4 = inlined_call_operand.vmem [shape: f32[1,32], index: 4, kind: input, shape index: {}]   ;;  %s1049_s5 = inlined_call_operand.<no memory space> [shape: f32[1,1], index: 5, kind: input, shape index: {}]   ;;  %s1050_s6 = inlined_call_operand.hbm [shape: f32[1,1], index: 6, kind: output, shape index: {}]  }
   0x1   :  { %v11_v0 = vstv %s1049_s5 }
   0x2   :  { %12 = vst [vmem:[#allocation2] sm:$0x1] %v11_v0 }
   0x3   :  { %13 = vsyncpa [#allocation4], 0 }
   0x4   :  { %14 = vsyncpa [#allocation7], 0 }
   0x5   :  { %15 = vsyncpa [#allocation5], 0  ;;  %s22_s25 = sshll.u32 %s1045_s1, 4  ;;  %s927_s26 = smov [#allocation3]   ;;  %s23_s25 = int_to_ptr.hbm [resolvable:$true] %s22_s25 }
   0x6   :  { %s24_s27 = sshll.u32 %s927_s26, 4  ;;  %s35_s30 = sshll.u32 %s1046_s2, 4  ;;  %s25_s27 = int_to_ptr.vmem [resolvable:$true] %s24_s27  ;;  %s36_s30 = int_to_ptr.hbm [resolvable:$true] %s35_s30 }
   0x7   :  { %s928_s7 = smov 64   ;;  %s929_s8 = smov 4  }
   0x8   :  { %30 = dma.hbm_to_vmem [thread:$0]  %s23_s25, 704, %s25_s27, [#allocation4], %s928_s7, %s928_s7, %s929_s8  }
   0x9   :  { %s930_s5 = smov [#allocation6]  }
   0xa   :  { %s37_s9 = sshll.u32 %s930_s5, 4  ;;  %s38_s9 = int_to_ptr.vmem [resolvable:$true] %s37_s9 }
   0xb   :  { %43 = dma.hbm_to_vmem [thread:$0]  %s36_s30, 256, %s38_s9, [#allocation7], %s928_s7, %s928_s7, %s929_s8  }
   0xc   :  { %921 = dma.done.wait [#allocation4], 704  }
   0xd   :  { %922 = vsyncadd [#allocation4], 4294966592 }
   0xe   :  { %923 = dma.done.wait [#allocation7], 256  }
   0xf   :  { %924 = vsyncadd [#allocation7], 4294967040  ;;  %v70_v1 = vld [vmem:[#allocation3 + $0x28] sm:$0x7]  ;;  %v769_v3 = vld [vmem:[#allocation6 + $0x8] sm:$0xff]  ;;  %vm112_vm0 = vcmask 1042432  }
  0x10   :  { %v96_v2 = vunpack.c.l.b16 %v70_v1  ;;  %v768_v4 = vld [vmem:[#allocation6] sm:$0xff]  ;;  %155 = vmatpush.bf16.msra.mxu1 %v769_v3  ;;  %213 = vmatpush.bf16.msra.mxu2 %v769_v3  ;;  %v767_v7 = vld [vmem:[#allocation3 + $0x20] sm:$0xff]  ;;  %v766_v8 = vld [vmem:[#allocation3 + $0x18] sm:$0xff]  ;;  %v931_v9 = vmov 0   ;;  %vm108_vm1 = vcmask 703488   ;;  %vm145_vm6 = vcmask 261120  }
  0x11   :  { %279 = vmatpush.bf16.msra.mxu3 %v769_v3  ;;  %v765_v10 = vld [vmem:[#allocation3 + $0x10] sm:$0xff]  ;;  %v764_v11 = vld [vmem:[#allocation3 + $0x8] sm:$0xff]  ;;  %v763_v12 = vld [vmem:[#allocation3] sm:$0xff]  ;;  %s933_s13 = smov 96   ;;  %s707_s17 = sshll.u32 %s1050_s6, 4  ;;  %s708_s17 = int_to_ptr.hbm [resolvable:$true] %s707_s17 }
  0x12   :  { %v102_v5 = vpack.c.b16 %v96_v2, %v96_v2  ;;  %v59_v13 = vld [vmem:[%s1044_s0] sm:$0xf]  ;;  %s932_s0 = smov 32  }
  0x13   :  { %v778_v16 = vld [vmem:[%s1047_s3] ss:$0 sm:$0xff] }
  0x14   :  { %v114_v6 = vsel %vm112_vm0, %v102_v5, 0  ;;  %156 = vmatpush.bf16.msra.mxu1 %v768_v4  ;;  %214 = vmatpush.bf16.msra.mxu2 %v768_v4 }
  0x15   :  { %118 = vmatpush.bf16.msra.mxu0 %v114_v6  ;;  %280 = vmatpush.bf16.msra.mxu3 %v768_v4 }
  0x17   :  { %157 = vmatmul.bf16.vlgmr.msra.gmra.mxu1 %v931_v9 }
  0x18   :  { %344 = vmatpush.bf16.msrb.mxu1 %v769_v3  ;;  %411 = vmatpush.bf16.msrb.mxu2 %v769_v3 }
  0x19   :  { %476 = vmatpush.bf16.msrb.mxu3 %v769_v3  ;;  %119 = vmatpush.bf16.msra.mxu0 %v767_v7 }
  0x1c   :  { %345 = vmatpush.bf16.msrb.mxu1 %v768_v4  ;;  %412 = vmatpush.bf16.msrb.mxu2 %v768_v4 }
  0x1d   :  { %477 = vmatpush.bf16.msrb.mxu3 %v768_v4  ;;  %120 = vmatpush.bf16.msra.mxu0 %v766_v8 }
  0x20   :  { %608 = vmatpush.bf16.msra.mxu1 %v769_v3 }
  0x21   :  { %121 = vmatpush.bf16.msra.mxu0 %v765_v10 }
  0x24   :  { %609 = vmatpush.bf16.msra.mxu1 %v768_v4 }
  0x25   :  { %122 = vmatpush.bf16.msra.mxu0 %v764_v11 }
  0x29   :  { %123 = vmatpush.bf16.msra.mxu0 %v763_v12 }
  0x2c   :  { %738 = vmatmul.msk.bf16.vlgmr.msra.gmra.mxu0 %vm108_vm1, %v59_v13 }
  0x2d   :  { %543 = vmatpush.bf16.msrb.mxu0 %v769_v3 }
  0x31   :  { %544 = vmatpush.bf16.msrb.mxu0 %v768_v4 }
  0x94   :  { %v158_v14 = vpop.f32.mrf.mxu1 }
  0x9c   :  { %v160_v15 = vpop.f32.mrf.mxu1 }
  0xa9   :  { %v125_v17 = vpop.f32.mrf.mxu0 }
  0xaa   :  { %v989_v18 = vadd.f32 %v778_v16, %v125_v17 }
  0xac   :  { %v162_v19 = vadd.f32 %v158_v14, %v989_v18 }
  0xae   :  { %781 = vtanh.f32 %v162_v19  ;;  %v747_v22 = vmul.f32 -1.442695, %v162_v19 }
  0xb0   :  { %783 = vpow2.f32 %v747_v22 }
  0xb1   :  { %v127_v20 = vpop.f32.mrf.mxu0 }
  0xb4   :  { %v782_v21 = vpop.eup %781 }
  0xb5   :  { %185 = vrot.lane.b32.xlu0 %v782_v21, %s928_s7 }
  0xb6   :  { %v784_v23 = vpop.eup %783 }
  0xb7   :  { %v166_v24 = vadd.f32 1.0, %v784_v23 }
  0xb9   :  { %785 = vrcp.f32 %v166_v24  ;;  %v178_v30 = vand.u32 2147483648, %v166_v24  ;;  %vm172_vm3 = vweird.f32 %v166_v24  ;;  %v176_v31 = vand.u32 2147483647, %v166_v24 }
  0xbb   :  { %v179_v33 = vor.u32 1.1754944e-38, %v178_v30  ;;  %vm177_vm5 = vcmp.eq.f32.partialorder %v176_v31, 8.507059e+37 }
  0xbf   :  { %v786_v25 = vpop.eup %785 }
  0xc0   :  { %v168_v26 = vmul.f32 %v786_v25, %v166_v24  ;;  %vm173_vm2 = vweird.f32 %v786_v25 }
  0xc1   :  { %vm174_vm4 = vmor %vm172_vm3, %vm173_vm2 }
  0xc2   :  { %v169_v27 = vsub.f32 1.0, %v168_v26 }
  0xc4   :  { %v170_v28 = vmul.f32 %v786_v25, %v169_v27 }
  0xc6   :  { %v171_v29 = vadd.f32 %v786_v25, %v170_v28 }
  0xc8   :  { %v175_v32 = vsel %vm174_vm4, %v786_v25, %v171_v29 }
  0xc9   :  { %v180_v35 = vsel %vm177_vm5, %v179_v33, %v175_v32 }
  0xca   :  { %v183_v37 = vmul.f32 0.0, %v180_v35 }
 0x127   :  { %v186_v34 = vpop.permute.xlu0 %185 }
 0x128   :  { %v188_v36 = vmul.f32 %v186_v34, %v180_v35 }
 0x12a   :  { %190 = vrot.lane.b32.xlu0 %v188_v36, %s932_s0 }
 0x19c   :  { %v191_v38 = vpop.permute.xlu0 %190 }
 0x19d   :  { %v193_v39 = vadd.f32 %v191_v38, %v183_v37 }
 0x19f   :  { %787 = vtanh.f32 %v193_v39  ;;  %v245_v1 = vrot.slane %v193_v39, 7 }
 0x1a5   :  { %v788_v40 = vpop.eup %787 }
 0x1a6   :  { %196 = vrot.lane.b32.xlu1 %v788_v40, %s928_s7 }
 0x218   :  { %v197_v41 = vpop.permute.xlu1 %196 }
 0x219   :  { %v199_v42 = vmul.f32 %v197_v41, %v180_v35 }
 0x21b   :  { %v200_v43 = vpack.c.bf16 %v199_v42, %v199_v42 }
 0x21d   :  { %202 = vrot.lane.b32.xlu1 %v200_v43, %s932_s0 }
 0x28f   :  { %v203_v44 = vpop.permute.xlu1 %202 }
 0x290   :  { %748 = vmatmul.msk.bf16.vlgmr.msra.gmra.mxu2 %vm145_vm6, %v203_v44 }
 0x313   :  { %v216_v45 = vpop.f32.mrf.mxu2 }
 0x314   :  { %v221_v46 = vrot.slane %v216_v45, 7 }
 0x316   :  { %v223_v47 = vadd.f32 %v221_v46, %v989_v18 }
 0x318   :  { %789 = vtanh.f32 %v223_v47  ;;  %v749_v50 = vmul.f32 -1.442695, %v223_v47 }
 0x31a   :  { %791 = vpow2.f32 %v749_v50 }
 0x31b   :  { %v218_v48 = vpop.f32.mrf.mxu2 }
 0x31e   :  { %v790_v49 = vpop.eup %789 }
 0x31f   :  { %249 = vrot.lane.b32.xlu2 %v790_v49, %s928_s7 }
 0x320   :  { %v792_v51 = vpop.eup %791 }
 0x321   :  { %v227_v52 = vadd.f32 1.0, %v792_v51 }
 0x323   :  { %793 = vrcp.f32 %v227_v52  ;;  %v239_v58 = vand.u32 2147483648, %v227_v52  ;;  %vm233_vm8 = vweird.f32 %v227_v52  ;;  %v237_v59 = vand.u32 2147483647, %v227_v52 }
 0x325   :  { %v240_v61 = vor.u32 1.1754944e-38, %v239_v58  ;;  %vm238_vm10 = vcmp.eq.f32.partialorder %v237_v59, 8.507059e+37 }
 0x329   :  { %v794_v53 = vpop.eup %793 }
 0x32a   :  { %v229_v54 = vmul.f32 %v794_v53, %v227_v52  ;;  %vm234_vm7 = vweird.f32 %v794_v53 }
 0x32b   :  { %vm235_vm9 = vmor %vm233_vm8, %vm234_vm7 }
 0x32c   :  { %v230_v55 = vsub.f32 1.0, %v229_v54 }
 0x32e   :  { %v231_v56 = vmul.f32 %v794_v53, %v230_v55 }
 0x330   :  { %v232_v57 = vadd.f32 %v794_v53, %v231_v56 }
 0x332   :  { %v236_v60 = vsel %vm235_vm9, %v794_v53, %v232_v57 }
 0x333   :  { %v241_v63 = vsel %vm238_vm10, %v240_v61, %v236_v60 }
 0x334   :  { %v247_v2 = vmul.f32 %v245_v1, %v241_v63 }
 0x379   :  { %v250_v62 = vpop.permute.xlu2 %249 }
 0x37a   :  { %v252_v0 = vmul.f32 %v250_v62, %v241_v63 }
 0x37c   :  { %254 = vrot.lane.b32.xlu2 %v252_v0, %s932_s0 }
 0x3d6   :  { %v255_v3 = vpop.permute.xlu2 %254 }
 0x3d7   :  { %v257_v4 = vadd.f32 %v255_v3, %v247_v2 }
 0x3d9   :  { %795 = vtanh.f32 %v257_v4  ;;  %v311_v32 = vrot.slane %v257_v4, 7 }
 0x3df   :  { %v796_v5 = vpop.eup %795 }
 0x3e0   :  { %260 = vrot.lane.b32.xlu0 %v796_v5, %s928_s7 }
 0x452   :  { %v261_v6 = vpop.permute.xlu0 %260 }
 0x453   :  { %v263_v7 = vmul.f32 %v261_v6, %v241_v63 }
 0x455   :  { %v264_v8 = vpack.c.bf16 %v263_v7, %v263_v7 }
 0x457   :  { %v266_v9 = vshrl.u32 %v264_v8, 16 }
 0x459   :  { %268 = vrot.lane.b32.xlu1 %v266_v9, %s932_s0 }
 0x4cb   :  { %v269_v10 = vpop.permute.xlu1 %268 }
 0x4cc   :  { %750 = vmatmul.msk.bf16.vlgmr.msra.gmra.mxu3 %vm145_vm6, %v269_v10 }
 0x54f   :  { %v282_v11 = vpop.f32.mrf.mxu3 }
 0x550   :  { %v287_v12 = vrot.slane %v282_v11, 6 }
 0x552   :  { %v289_v13 = vadd.f32 %v287_v12, %v989_v18 }
 0x554   :  { %797 = vtanh.f32 %v289_v13  ;;  %v751_v16 = vmul.f32 -1.442695, %v289_v13 }
 0x556   :  { %799 = vpow2.f32 %v751_v16 }
 0x557   :  { %v284_v14 = vpop.f32.mrf.mxu3 }
 0x55a   :  { %v798_v15 = vpop.eup %797 }
 0x55b   :  { %315 = vrot.lane.b32.xlu2 %v798_v15, %s928_s7 }
 0x55c   :  { %v800_v17 = vpop.eup %799 }
 0x55d   :  { %v293_v19 = vadd.f32 1.0, %v800_v17 }
 0x55f   :  { %801 = vrcp.f32 %v293_v19  ;;  %v305_v25 = vand.u32 2147483648, %v293_v19  ;;  %vm299_vm12 = vweird.f32 %v293_v19  ;;  %v303_v26 = vand.u32 2147483647, %v293_v19 }
 0x561   :  { %v306_v28 = vor.u32 1.1754944e-38, %v305_v25  ;;  %vm304_vm14 = vcmp.eq.f32.partialorder %v303_v26, 8.507059e+37 }
 0x565   :  { %v802_v20 = vpop.eup %801 }
 0x566   :  { %v295_v21 = vmul.f32 %v802_v20, %v293_v19  ;;  %vm300_vm11 = vweird.f32 %v802_v20 }
 0x567   :  { %vm301_vm13 = vmor %vm299_vm12, %vm300_vm11 }
 0x568   :  { %v296_v22 = vsub.f32 1.0, %v295_v21 }
 0x56a   :  { %v297_v23 = vmul.f32 %v802_v20, %v296_v22 }
 0x56c   :  { %v298_v24 = vadd.f32 %v802_v20, %v297_v23 }
 0x56e   :  { %v302_v27 = vsel %vm301_vm13, %v802_v20, %v298_v24 }
 0x56f   :  { %v307_v30 = vsel %vm304_vm14, %v306_v28, %v302_v27 }
 0x570   :  { %v313_v33 = vmul.f32 %v311_v32, %v307_v30 }
 0x5b5   :  { %v316_v29 = vpop.permute.xlu2 %315 }
 0x5b6   :  { %v318_v31 = vmul.f32 %v316_v29, %v307_v30 }
 0x5b8   :  { %320 = vrot.lane.b32.xlu0 %v318_v31, %s932_s0 }
 0x62a   :  { %v321_v34 = vpop.permute.xlu0 %320 }
 0x62b   :  { %v323_v35 = vadd.f32 %v321_v34, %v313_v33 }
 0x62d   :  { %803 = vtanh.f32 %v323_v35  ;;  %v376_v62 = vrot.slane %v323_v35, 7 }
 0x633   :  { %v804_v36 = vpop.eup %803 }
 0x634   :  { %326 = vrot.lane.b32.xlu1 %v804_v36, %s928_s7 }
 0x6a6   :  { %v327_v37 = vpop.permute.xlu1 %326 }
 0x6a7   :  { %v329_v38 = vmul.f32 %v327_v37, %v307_v30 }
 0x6a9   :  { %v330_v39 = vpack.c.bf16 %v329_v38, %v329_v38 }
 0x6ab   :  { %v332_v40 = vrot.slane %v330_v39, 1 }
 0x6ad   :  { %333 = vrot.lane.b32.xlu2 %v332_v40, %s932_s0 }
 0x707   :  { %v334_v41 = vpop.permute.xlu2 %333 }
 0x708   :  { %752 = vmatmul.msk.bf16.vlgmr.msrb.gmra.mxu1 %vm145_vm6, %v334_v41 }
 0x785   :  { %v347_v42 = vpop.f32.mrf.mxu1 }
 0x786   :  { %v352_v43 = vrot.slane %v347_v42, 5 }
 0x788   :  { %v354_v44 = vadd.f32 %v352_v43, %v989_v18 }
 0x78a   :  { %805 = vtanh.f32 %v354_v44  ;;  %v753_v47 = vmul.f32 -1.442695, %v354_v44 }
 0x78c   :  { %807 = vpow2.f32 %v753_v47 }
 0x78d   :  { %v349_v45 = vpop.f32.mrf.mxu1 }
 0x790   :  { %v806_v46 = vpop.eup %805 }
 0x791   :  { %380 = vrot.lane.b32.xlu0 %v806_v46, %s928_s7 }
 0x792   :  { %v808_v48 = vpop.eup %807 }
 0x793   :  { %v358_v49 = vadd.f32 1.0, %v808_v48 }
 0x795   :  { %809 = vrcp.f32 %v358_v49  ;;  %v370_v55 = vand.u32 2147483648, %v358_v49  ;;  %vm364_vm0 = vweird.f32 %v358_v49  ;;  %v368_v56 = vand.u32 2147483647, %v358_v49 }
 0x797   :  { %v371_v58 = vor.u32 1.1754944e-38, %v370_v55  ;;  %vm369_vm2 = vcmp.eq.f32.partialorder %v368_v56, 8.507059e+37 }
 0x79b   :  { %v810_v50 = vpop.eup %809 }
 0x79c   :  { %v360_v51 = vmul.f32 %v810_v50, %v358_v49  ;;  %vm365_vm15 = vweird.f32 %v810_v50 }
 0x79d   :  { %vm366_vm1 = vmor %vm364_vm0, %vm365_vm15 }
 0x79e   :  { %v361_v52 = vsub.f32 1.0, %v360_v51 }
 0x7a0   :  { %v362_v53 = vmul.f32 %v810_v50, %v361_v52 }
 0x7a2   :  { %v363_v54 = vadd.f32 %v810_v50, %v362_v53 }
 0x7a4   :  { %v367_v57 = vsel %vm366_vm1, %v810_v50, %v363_v54 }
 0x7a5   :  { %v372_v60 = vsel %vm369_vm2, %v371_v58, %v367_v57 }
 0x7a6   :  { %v378_v63 = vmul.f32 %v376_v62, %v372_v60 }
 0x803   :  { %v381_v59 = vpop.permute.xlu0 %380 }
 0x804   :  { %v383_v61 = vmul.f32 %v381_v59, %v372_v60 }
 0x806   :  { %385 = vrot.lane.b32.xlu1 %v383_v61, %s932_s0 }
 0x878   :  { %v386_v0 = vpop.permute.xlu1 %385 }
 0x879   :  { %v388_v1 = vadd.f32 %v386_v0, %v378_v63 }
 0x87b   :  { %811 = vtanh.f32 %v388_v1  ;;  %v443_v30 = vrot.slane %v388_v1, 7 }
 0x881   :  { %v812_v2 = vpop.eup %811 }
 0x882   :  { %391 = vrot.lane.b32.xlu2 %v812_v2, %s928_s7 }
 0x8dc   :  { %v392_v3 = vpop.permute.xlu2 %391 }
 0x8dd   :  { %v394_v4 = vmul.f32 %v392_v3, %v372_v60 }
 0x8df   :  { %v395_v5 = vpack.c.bf16 %v394_v4, %v394_v4 }
 0x8e1   :  { %v397_v6 = vshrl.u32 %v395_v5, 16 }
 0x8e3   :  { %v399_v7 = vrot.slane %v397_v6, 1 }
 0x8e5   :  { %400 = vrot.lane.b32.xlu0 %v399_v7, %s932_s0 }
 0x957   :  { %v401_v8 = vpop.permute.xlu0 %400 }
 0x958   :  { %754 = vmatmul.msk.bf16.vlgmr.msrb.gmra.mxu2 %vm145_vm6, %v401_v8 }
 0x9db   :  { %v414_v9 = vpop.f32.mrf.mxu2 }
 0x9dc   :  { %v419_v10 = vrot.slane %v414_v9, 4 }
 0x9de   :  { %v421_v11 = vadd.f32 %v419_v10, %v989_v18 }
 0x9e0   :  { %813 = vtanh.f32 %v421_v11  ;;  %v755_v14 = vmul.f32 -1.442695, %v421_v11 }
 0x9e2   :  { %815 = vpow2.f32 %v755_v14 }
 0x9e3   :  { %v416_v12 = vpop.f32.mrf.mxu2 }
 0x9e6   :  { %v814_v13 = vpop.eup %813 }
 0x9e7   :  { %447 = vrot.lane.b32.xlu1 %v814_v13, %s928_s7 }
 0x9e8   :  { %v816_v15 = vpop.eup %815 }
 0x9e9   :  { %v425_v16 = vadd.f32 1.0, %v816_v15 }
 0x9eb   :  { %817 = vrcp.f32 %v425_v16  ;;  %v437_v23 = vand.u32 2147483648, %v425_v16  ;;  %vm431_vm4 = vweird.f32 %v425_v16  ;;  %v435_v24 = vand.u32 2147483647, %v425_v16 }
 0x9ed   :  { %v438_v26 = vor.u32 1.1754944e-38, %v437_v23  ;;  %vm436_vm7 = vcmp.eq.f32.partialorder %v435_v24, 8.507059e+37 }
 0x9f1   :  { %v818_v17 = vpop.eup %817 }
 0x9f2   :  { %v427_v19 = vmul.f32 %v818_v17, %v425_v16  ;;  %vm432_vm3 = vweird.f32 %v818_v17 }
 0x9f3   :  { %vm433_vm5 = vmor %vm431_vm4, %vm432_vm3  ;;  %vm670_vm3 = vcmask 261127  }
 0x9f4   :  { %v428_v20 = vsub.f32 1.0, %v427_v19 }
 0x9f6   :  { %v429_v21 = vmul.f32 %v818_v17, %v428_v20 }
 0x9f8   :  { %v430_v22 = vadd.f32 %v818_v17, %v429_v21 }
 0x9fa   :  { %v434_v25 = vsel %vm433_vm5, %v818_v17, %v430_v22 }
 0x9fb   :  { %v439_v28 = vsel %vm436_vm7, %v438_v26, %v434_v25 }
 0x9fc   :  { %v445_v31 = vmul.f32 %v443_v30, %v439_v28 }
 0xa59   :  { %v448_v27 = vpop.permute.xlu1 %447 }
 0xa5a   :  { %v450_v29 = vmul.f32 %v448_v27, %v439_v28 }
 0xa5c   :  { %452 = vrot.lane.b32.xlu2 %v450_v29, %s932_s0 }
 0xab6   :  { %v453_v32 = vpop.permute.xlu2 %452 }
 0xab7   :  { %v455_v33 = vadd.f32 %v453_v32, %v445_v31 }
 0xab9   :  { %819 = vtanh.f32 %v455_v33  ;;  %v508_v60 = vrot.slane %v455_v33, 7 }
 0xabf   :  { %v820_v34 = vpop.eup %819 }
 0xac0   :  { %458 = vrot.lane.b32.xlu0 %v820_v34, %s928_s7 }
 0xb32   :  { %v459_v35 = vpop.permute.xlu0 %458 }
 0xb33   :  { %v461_v36 = vmul.f32 %v459_v35, %v439_v28 }
 0xb35   :  { %v462_v37 = vpack.c.bf16 %v461_v36, %v461_v36 }
 0xb37   :  { %v464_v38 = vrot.slane %v462_v37, 2 }
 0xb39   :  { %465 = vrot.lane.b32.xlu1 %v464_v38, %s932_s0 }
 0xbab   :  { %v466_v39 = vpop.permute.xlu1 %465 }
 0xbac   :  { %756 = vmatmul.msk.bf16.vlgmr.msrb.gmra.mxu3 %vm145_vm6, %v466_v39 }
 0xc2f   :  { %v479_v40 = vpop.f32.mrf.mxu3 }
 0xc30   :  { %v484_v41 = vrot.slane %v479_v40, 3 }
 0xc32   :  { %v486_v42 = vadd.f32 %v484_v41, %v989_v18 }
 0xc34   :  { %821 = vtanh.f32 %v486_v42  ;;  %v757_v45 = vmul.f32 -1.442695, %v486_v42 }
 0xc36   :  { %823 = vpow2.f32 %v757_v45 }
 0xc37   :  { %v481_v43 = vpop.f32.mrf.mxu3 }
 0xc3a   :  { %v822_v44 = vpop.eup %821 }
 0xc3b   :  { %512 = vrot.lane.b32.xlu2 %v822_v44, %s928_s7 }
 0xc3c   :  { %v824_v46 = vpop.eup %823 }
 0xc3d   :  { %v490_v47 = vadd.f32 1.0, %v824_v46 }
 0xc3f   :  { %825 = vrcp.f32 %v490_v47  ;;  %v502_v53 = vand.u32 2147483648, %v490_v47  ;;  %vm496_vm9 = vweird.f32 %v490_v47  ;;  %v500_v54 = vand.u32 2147483647, %v490_v47 }
 0xc41   :  { %v503_v56 = vor.u32 1.1754944e-38, %v502_v53  ;;  %vm501_vm11 = vcmp.eq.f32.partialorder %v500_v54, 8.507059e+37 }
 0xc45   :  { %v826_v48 = vpop.eup %825 }
 0xc46   :  { %v492_v49 = vmul.f32 %v826_v48, %v490_v47  ;;  %vm497_vm8 = vweird.f32 %v826_v48 }
 0xc47   :  { %vm498_vm10 = vmor %vm496_vm9, %vm497_vm8  ;;  %vm698_vm8 = vcmask 7175  }
 0xc48   :  { %v493_v50 = vsub.f32 1.0, %v492_v49 }
 0xc4a   :  { %v494_v51 = vmul.f32 %v826_v48, %v493_v50 }
 0xc4c   :  { %v495_v52 = vadd.f32 %v826_v48, %v494_v51 }
 0xc4e   :  { %v499_v55 = vsel %vm498_vm10, %v826_v48, %v495_v52 }
 0xc4f   :  { %v504_v58 = vsel %vm501_vm11, %v503_v56, %v499_v55 }
 0xc50   :  { %v510_v61 = vmul.f32 %v508_v60, %v504_v58 }
 0xc95   :  { %v513_v57 = vpop.permute.xlu2 %512 }
 0xc96   :  { %v515_v59 = vmul.f32 %v513_v57, %v504_v58  ;;  %v779_v57 = vld [vmem:[%s1048_s4] ss:$0 sm:$0xff]  ;;  %s934_s4 = smov [#allocation8]  }
 0xc97   :  { %s705_s14 = sshll.u32 %s934_s4, 4  ;;  %s706_s14 = int_to_ptr.vmem [resolvable:$true] %s705_s14 }
 0xc98   :  { %517 = vrot.lane.b32.xlu0 %v515_v59, %s932_s0 }
 0xd0a   :  { %v518_v62 = vpop.permute.xlu0 %517 }
 0xd0b   :  { %v520_v63 = vadd.f32 %v518_v62, %v510_v61 }
 0xd0d   :  { %827 = vtanh.f32 %v520_v63  ;;  %v575_v28 = vrot.slane %v520_v63, 7 }
 0xd13   :  { %v828_v0 = vpop.eup %827 }
 0xd14   :  { %523 = vrot.lane.b32.xlu1 %v828_v0, %s928_s7 }
 0xd86   :  { %v524_v1 = vpop.permute.xlu1 %523 }
 0xd87   :  { %v526_v2 = vmul.f32 %v524_v1, %v504_v58 }
 0xd89   :  { %v527_v3 = vpack.c.bf16 %v526_v2, %v526_v2 }
 0xd8b   :  { %v529_v4 = vshrl.u32 %v527_v3, 16 }
 0xd8d   :  { %v531_v5 = vrot.slane %v529_v4, 2 }
 0xd8f   :  { %532 = vrot.lane.b32.xlu2 %v531_v5, %s932_s0  ;;  %v780_v5 = vld [vmem:[#allocation2] ss:$0 sm:$0xff] }
 0xde9   :  { %v533_v6 = vpop.permute.xlu2 %532 }
 0xdea   :  { %758 = vmatmul.msk.bf16.vlgmr.msrb.gmra.mxu0 %vm145_vm6, %v533_v6 }
 0xe67   :  { %v546_v7 = vpop.f32.mrf.mxu0 }
 0xe68   :  { %v551_v8 = vrot.slane %v546_v7, 2 }
 0xe6a   :  { %v553_v9 = vadd.f32 %v551_v8, %v989_v18 }
 0xe6c   :  { %829 = vtanh.f32 %v553_v9  ;;  %v759_v12 = vmul.f32 -1.442695, %v553_v9 }
 0xe6e   :  { %831 = vpow2.f32 %v759_v12 }
 0xe6f   :  { %v548_v10 = vpop.f32.mrf.mxu0 }
 0xe72   :  { %v830_v11 = vpop.eup %829 }
 0xe73   :  { %579 = vrot.lane.b32.xlu0 %v830_v11, %s928_s7 }
 0xe74   :  { %v832_v13 = vpop.eup %831 }
 0xe75   :  { %v557_v14 = vadd.f32 1.0, %v832_v13 }
 0xe77   :  { %833 = vrcp.f32 %v557_v14  ;;  %v569_v21 = vand.u32 2147483648, %v557_v14  ;;  %vm563_vm13 = vweird.f32 %v557_v14  ;;  %v567_v22 = vand.u32 2147483647, %v557_v14 }
 0xe79   :  { %v570_v24 = vor.u32 1.1754944e-38, %v569_v21  ;;  %vm568_vm15 = vcmp.eq.f32.partialorder %v567_v22, 8.507059e+37 }
 0xe7d   :  { %v834_v15 = vpop.eup %833 }
 0xe7e   :  { %v559_v16 = vmul.f32 %v834_v15, %v557_v14  ;;  %vm564_vm12 = vweird.f32 %v834_v15 }
 0xe7f   :  { %vm565_vm14 = vmor %vm563_vm13, %vm564_vm12 }
 0xe80   :  { %v560_v17 = vsub.f32 1.0, %v559_v16 }
 0xe82   :  { %v561_v19 = vmul.f32 %v834_v15, %v560_v17 }
 0xe84   :  { %v562_v20 = vadd.f32 %v834_v15, %v561_v19 }
 0xe86   :  { %v566_v23 = vsel %vm565_vm14, %v834_v15, %v562_v20 }
 0xe87   :  { %v571_v26 = vsel %vm568_vm15, %v570_v24, %v566_v23 }
 0xe88   :  { %v577_v29 = vmul.f32 %v575_v28, %v571_v26 }
 0xee5   :  { %v580_v25 = vpop.permute.xlu0 %579 }
 0xee6   :  { %v582_v27 = vmul.f32 %v580_v25, %v571_v26 }
 0xee8   :  { %584 = vrot.lane.b32.xlu1 %v582_v27, %s932_s0 }
 0xf5a   :  { %v585_v30 = vpop.permute.xlu1 %584 }
 0xf5b   :  { %v587_v31 = vadd.f32 %v585_v30, %v577_v29 }
 0xf5d   :  { %835 = vtanh.f32 %v587_v31  ;;  %v640_v58 = vrot.slane %v587_v31, 7 }
 0xf63   :  { %v836_v32 = vpop.eup %835 }
 0xf64   :  { %590 = vrot.lane.b32.xlu2 %v836_v32, %s928_s7 }
 0xfbe   :  { %v591_v33 = vpop.permute.xlu2 %590 }
 0xfbf   :  { %v593_v34 = vmul.f32 %v591_v33, %v571_v26 }
 0xfc1   :  { %v594_v35 = vpack.c.bf16 %v593_v34, %v593_v34 }
 0xfc3   :  { %v596_v36 = vrot.slane %v594_v35, 3 }
 0xfc5   :  { %597 = vrot.lane.b32.xlu0 %v596_v36, %s932_s0 }
0x1037   :  { %v598_v37 = vpop.permute.xlu0 %597 }
0x1038   :  { %760 = vmatmul.msk.bf16.vlgmr.msra.gmra.mxu1 %vm145_vm6, %v598_v37 }
0x10b5   :  { %v611_v38 = vpop.f32.mrf.mxu1 }
0x10b6   :  { %v616_v39 = vrot.slane %v611_v38, 1 }
0x10b8   :  { %v618_v40 = vadd.f32 %v616_v39, %v989_v18 }
0x10ba   :  { %837 = vtanh.f32 %v618_v40  ;;  %v761_v43 = vmul.f32 -1.442695, %v618_v40 }
0x10bc   :  { %839 = vpow2.f32 %v761_v43 }
0x10bd   :  { %v613_v41 = vpop.f32.mrf.mxu1 }
0x10c0   :  { %v838_v42 = vpop.eup %837 }
0x10c1   :  { %644 = vrot.lane.b32.xlu1 %v838_v42, %s928_s7 }
0x10c2   :  { %v840_v44 = vpop.eup %839 }
0x10c3   :  { %v622_v45 = vadd.f32 1.0, %v840_v44 }
0x10c5   :  { %841 = vrcp.f32 %v622_v45  ;;  %v634_v51 = vand.u32 2147483648, %v622_v45  ;;  %vm628_vm0 = vweird.f32 %v622_v45  ;;  %v632_v52 = vand.u32 2147483647, %v622_v45 }
0x10c7   :  { %v635_v53 = vor.u32 1.1754944e-38, %v634_v51  ;;  %vm633_vm2 = vcmp.eq.f32.partialorder %v632_v52, 8.507059e+37 }
0x10c9   :  { %662 = vrot.lane.b32.xlu1 %v779_v57, %s933_s13 }
0x10cb   :  { %v842_v46 = vpop.eup %841 }
0x10cc   :  { %v624_v47 = vmul.f32 %v842_v46, %v622_v45  ;;  %vm629_vm6 = vweird.f32 %v842_v46 }
0x10cd   :  { %vm630_vm1 = vmor %vm628_vm0, %vm629_vm6 }
0x10ce   :  { %v625_v48 = vsub.f32 1.0, %v624_v47 }
0x10d0   :  { %v626_v49 = vmul.f32 %v842_v46, %v625_v48 }
0x10d2   :  { %v627_v50 = vadd.f32 %v842_v46, %v626_v49 }
0x10d4   :  { %v631_v18 = vsel %vm630_vm1, %v842_v46, %v627_v50 }
0x10d5   :  { %v636_v55 = vsel %vm633_vm2, %v635_v53, %v631_v18 }
0x10d6   :  { %v642_v59 = vmul.f32 %v640_v58, %v636_v55 }
0x1133   :  { %v645_v54 = vpop.permute.xlu1 %644 }
0x1134   :  { %v647_v56 = vmul.f32 %v645_v54, %v636_v55 }
0x1136   :  { %649 = vrot.lane.b32.xlu2 %v647_v56, %s932_s0 }
0x113b   :  { %v663_v0 = vpop.permute.xlu1 %662 }
0x1190   :  { %v650_v60 = vpop.permute.xlu2 %649 }
0x1191   :  { %v652_v61 = vadd.f32 %v650_v60, %v642_v59 }
0x1193   :  { %843 = vtanh.f32 %v652_v61 }
0x1199   :  { %v844_v62 = vpop.eup %843 }
0x119a   :  { %655 = vrot.lane.b32.xlu0 %v844_v62, %s928_s7 }
0x120c   :  { %v656_v63 = vpop.permute.xlu0 %655 }
0x120d   :  { %v658_v1 = vmul.f32 %v656_v63, %v636_v55 }
0x120f   :  { %v665_v2 = vmul.f32 %v663_v0, %v658_v1 }
0x1211   :  { %667 = vrot.lane.b32.xlu2 %v665_v2, %s932_s0 }
0x126b   :  { %v668_v3 = vpop.permute.xlu2 %667 }
0x126c   :  { %v671_v4 = vsel %vm670_vm3, %v668_v3, 0.0 }
0x126d   :  { %672 = vadd.xlane.f32.xlu0 %v671_v4 }
0x12e0   :  { %v673_v6 = vpop.xlane.xlu0 %672 }
0x12e1   :  { %v678_v7 = vadd.f32 %v780_v5, %v673_v6 }
0x12e3   :  { %v762_v8 = vmul.f32 -1.442695, %v678_v7 }
0x12e5   :  { %845 = vpow2.f32 %v762_v8 }
0x12eb   :  { %v846_v9 = vpop.eup %845 }
0x12ec   :  { %v682_v10 = vadd.f32 1.0, %v846_v9 }
0x12ee   :  { %847 = vrcp.f32 %v682_v10  ;;  %v694_v14 = vand.u32 2147483648, %v682_v10  ;;  %v692_v16 = vand.u32 2147483647, %v682_v10  ;;  %vm688_vm5 = vweird.f32 %v682_v10 }
0x12f0   :  { %v695_v19 = vor.u32 1.1754944e-38, %v694_v14  ;;  %vm693_vm9 = vcmp.eq.f32.partialorder %v692_v16, 8.507059e+37 }
0x12f4   :  { %v848_v11 = vpop.eup %847 }
0x12f5   :  { %v684_v12 = vmul.f32 %v848_v11, %v682_v10  ;;  %vm689_vm4 = vweird.f32 %v848_v11 }
0x12f6   :  { %vm690_vm7 = vmor %vm688_vm5, %vm689_vm4 }
0x12f7   :  { %v685_v13 = vsub.f32 1.0, %v684_v12 }
0x12f9   :  { %v686_v15 = vmul.f32 %v848_v11, %v685_v13 }
0x12fb   :  { %v687_v17 = vadd.f32 %v848_v11, %v686_v15 }
0x12fd   :  { %v691_v20 = vsel %vm690_vm7, %v848_v11, %v687_v17 }
0x12fe   :  { %v696_v21 = vsel %vm693_vm9, %v695_v19, %v691_v20 }
0x12ff   :  { %699 = vst.msk [vmem:[#allocation8 - $0x7] sm:$0x80] %vm698_vm8, %v696_v21 }
0x1300   :  { %710 = dma.vmem_to_hbm [thread:$0]  %s706_s14, 16, %s708_s17, [#allocation5]  }
0x1301   :  { %925 = dma.done.wait [#allocation5], 16  }
0x1302   :  { %926 = vsyncadd [#allocation5], 4294967280 }
0x1303   :  { %715 = vsyncpa [#allocation4], 1 }
0x1304   :  { %716 = vsyncpa [#allocation7], 1 }
0x1305   :  { %717 = vsyncpa [#allocation5], 1 }

</bundles_post_ra>
